<compile_context>
chip_gen: v6e
topology: v6e:2x2x1
jax: 0.10.0
libtpu: 0.0.40
codegen_flags: <defaults>
</compile_context>

<pallas_src>
import jax
import jax.numpy as jnp
from jax import lax
from jax.experimental import pallas as pl
from jax.experimental.pallas import tpu as pltpu


def _largest_divisor_le(n, cap):
    cap = max(1, min(cap, n))
    for d in range(cap, 0, -1):
        if n % d == 0:
            return d
    return 1


def _sublane_quantum(dtype):
    # f32 -> 8 sublanes, bf16 -> 16, int8 -> 32 (sub-32-bit packs along sublanes).
    itemsize = jnp.dtype(dtype).itemsize
    return 8 * (4 // itemsize)


def _make_l2_kernel(b_tile, t_hw):
    lane_fold = (t_hw % 128 == 0)

    def kernel(out_ref, tgt_ref, part_ref, acc_ref):
        j = pl.program_id(1)

        @pl.when(j == 0)
        def _init():
            acc_ref[...] = jnp.zeros_like(acc_ref)

        # block: (b_tile, C, t_hw); channel axis is the sublane axis.
        d = out_ref[...].astype(jnp.float32) - tgt_ref[...].astype(jnp.float32)
        sq = jnp.sum(d * d, axis=1)          # (b_tile, t_hw)  channel reduce
        acc_ref[...] += jnp.sqrt(sq)         # per-lane accumulation (VPU only)

        @pl.when(j == pl.num_programs(1) - 1)
        def _finalize():
            a = acc_ref[...]
            if lane_fold:
                # fold lane groups of 128 -> (b_tile, 128); cheap, once per batch tile
                folded = a.reshape(b_tile, t_hw // 128, 128).sum(axis=1)
            else:
                s = jnp.sum(a, axis=-1, keepdims=True)                 # (b_tile, 1)
                lane = lax.broadcasted_iota(jnp.int32, (b_tile, 128), 1)
                folded = jnp.where(lane == 0, s, 0.0)
            part_ref[...] = folded.reshape(1, b_tile, 128)

    return kernel


def l2_loss(output, target):
    """Pallas TPU implementation of torch.norm(output - target, p=2, dim=1).mean()."""
    assert output.shape == target.shape
    N, C, H, W = output.shape
    HW = H * W
    out3 = output.reshape(N, C, HW)
    tgt3 = target.reshape(N, C, HW)
    itemsize = jnp.dtype(output.dtype).itemsize

    # ---- tile selection ----
    # Batch tile: keep >= 2 batch tiles when possible so the "parallel" grid
    # axis can be split across TensorCores (v7x megacore).
    b_tile = 1
    if N > 1:
        b_tile = _largest_divisor_le(N, min(8, N // 2))
    nb = N // b_tile

    # Spatial tile: largest multiple-of-128 divisor of HW that fits a ~16 MiB
    # double-buffered input budget (safe on v5e/v6e/v7x), capped at 2048 lanes.
    c_pad = -(-C // _sublane_quantum(output.dtype)) * _sublane_quantum(output.dtype)
    budget = 16 * 1024 * 1024
    per_lane = 2 * 2 * b_tile * c_pad * itemsize      # 2 inputs x 2 pipeline buffers
    t_cap = max(128, min(2048, (budget // per_lane) // 128 * 128))
    t_hw = HW
    if HW % 128 == 0:
        for t in range(t_cap, 0, -128):
            if HW % t == 0:
                t_hw = t
                break
    n_hw = HW // t_hw

    total_elems = float(N * HW)

    cost = pl.CostEstimate(
        flops=3 * N * C * HW + N * HW,
        transcendentals=N * HW,
        bytes_accessed=2 * N * C * HW * itemsize + nb * b_tile * 128 * 4,
    )

    partials = pl.pallas_call(
        _make_l2_kernel(b_tile, t_hw),
        out_shape=jax.ShapeDtypeStruct((nb, b_tile, 128), jnp.float32),
        grid_spec=pltpu.PrefetchScalarGridSpec(
            num_scalar_prefetch=0,
            grid=(nb, n_hw),
            in_specs=[
                pl.BlockSpec((b_tile, C, t_hw), lambda i, j: (i, 0, j)),
                pl.BlockSpec((b_tile, C, t_hw), lambda i, j: (i, 0, j)),
            ],
            out_specs=pl.BlockSpec((1, b_tile, 128), lambda i, j: (i, 0, 0)),
            scratch_shapes=[pltpu.VMEM((b_tile, t_hw), jnp.float32)],
        ),
        compiler_params=pltpu.CompilerParams(
            dimension_semantics=("parallel", "arbitrary"),
            vmem_limit_bytes=32 * 1024 * 1024,
        ),
        cost_estimate=cost,
    )(out3, tgt3)

    # Tiny epilogue outside the kernel: sum per-block partials, take the mean.
    return jnp.sum(partials) / total_elems


def l2_loss_ref(output, target):
    d = output.astype(jnp.float32) - target.astype(jnp.float32)
    norms = jnp.sqrt(jnp.sum(d * d, axis=1))  # norm over dim=1 (channels)
    return jnp.mean(norms)


if __name__ == "__main__":
    key = jax.random.PRNGKey(0)
    k1, k2 = jax.random.split(key)
    N, C, H, W = 2, 4, 16, 16
    output = jax.random.normal(k1, (N, C, H, W), dtype=jnp.float32)
    target = jax.random.normal(k2, (N, C, H, W), dtype=jnp.float32)

    loss = jax.block_until_ready(l2_loss(output, target))
    ref = jax.block_until_ready(l2_loss_ref(output, target))

    assert jnp.allclose(loss, ref, rtol=1e-5, atol=1e-5), (loss, ref)
    print("KERNEL_OK")
</pallas_src>

<mosaic_0001>
module attributes {stable_mosaic.version = 11 : i64} {
  func.func @kernel(%arg0: i32, %arg1: i32, %arg2: memref<1x4x256xf32, #tpu.memory_space<vmem>>, %arg3: memref<1x4x256xf32, #tpu.memory_space<vmem>>, %arg4: memref<1x1x128xf32, #tpu.memory_space<vmem>>, %arg5: memref<1x256xf32, #tpu.memory_space<vmem>>) attributes {dimension_semantics = [#tpu.dimension_semantics<parallel>, #tpu.dimension_semantics<arbitrary>], iteration_bounds = array<i64: 2, 1>, scalar_prefetch = 0 : i64, scratch_operands = 1 : i64, tpu.core_type = #tpu.core_type<tc>, window_params = [{transform_indices = @transform_0, window_bounds = array<i64: 1, 4, 256>}, {transform_indices = @transform_1, window_bounds = array<i64: 1, 4, 256>}, {transform_indices = @transform_2, window_bounds = array<i64: 1, 1, 128>}]} {
    %c0_i32 = arith.constant 0 : i32
    %0 = arith.cmpi eq, %arg1, %c0_i32 : i32
    %1 = arith.extui %0 : i1 to i32
    %c0_i32_0 = arith.constant 0 : i32
    %2 = arith.cmpi ne, %1, %c0_i32_0 : i32
    scf.if %2 {
      %cst_12 = arith.constant 0.000000e+00 : f32
      %15 = vector.broadcast %cst_12 : f32 to vector<1x256xf32>
      %c0_13 = arith.constant 0 : index
      %c0_14 = arith.constant 0 : index
      %16 = vector.load %arg5[%c0_13, %c0_14] : memref<1x256xf32, #tpu.memory_space<vmem>>, vector<1x256xf32>
      tpu.vector_store %arg5[%c0_13, %c0_14], %15 {strides = array<i32>} : memref<1x256xf32, #tpu.memory_space<vmem>>, vector<1x256xf32>,
    } else {
    }
    %c0 = arith.constant 0 : index
    %c0_1 = arith.constant 0 : index
    %c0_2 = arith.constant 0 : index
    %3 = vector.load %arg2[%c0, %c0_1, %c0_2] : memref<1x4x256xf32, #tpu.memory_space<vmem>>, vector<1x4x256xf32>
    %c0_3 = arith.constant 0 : index
    %c0_4 = arith.constant 0 : index
    %c0_5 = arith.constant 0 : index
    %4 = vector.load %arg3[%c0_3, %c0_4, %c0_5] : memref<1x4x256xf32, #tpu.memory_space<vmem>>, vector<1x4x256xf32>
    %5 = arith.subf %3, %4 : vector<1x4x256xf32>
    %6 = arith.mulf %5, %5 : vector<1x4x256xf32>
    %cst = arith.constant dense<0.000000e+00> : vector<1x256xf32>
    %7 = vector.multi_reduction <add>, %6, %cst [1] : vector<1x4x256xf32> to vector<1x256xf32>
    %c0_6 = arith.constant 0 : index
    %c0_7 = arith.constant 0 : index
    %8 = vector.load %arg5[%c0_6, %c0_7] : memref<1x256xf32, #tpu.memory_space<vmem>>, vector<1x256xf32>
    %9 = math.sqrt %7 : vector<1x256xf32>
    %10 = arith.addf %8, %9 : vector<1x256xf32>
    %c0_8 = arith.constant 0 : index
    %c0_9 = arith.constant 0 : index
    %11 = vector.load %arg5[%c0_8, %c0_9] : memref<1x256xf32, #tpu.memory_space<vmem>>, vector<1x256xf32>
    tpu.vector_store %arg5[%c0_8, %c0_9], %10 {strides = array<i32>} : memref<1x256xf32, #tpu.memory_space<vmem>>, vector<1x256xf32>,
    %c0_i32_10 = arith.constant 0 : i32
    %12 = arith.cmpi eq, %arg1, %c0_i32_10 : i32
    %13 = arith.extui %12 : i1 to i32
    %c0_i32_11 = arith.constant 0 : i32
    %14 = arith.cmpi ne, %13, %c0_i32_11 : i32
    scf.if %14 {
      %c0_12 = arith.constant 0 : index
      %c0_13 = arith.constant 0 : index
      %15 = vector.load %arg5[%c0_12, %c0_13] : memref<1x256xf32, #tpu.memory_space<vmem>>, vector<1x256xf32>
      %16 = vector.shape_cast %15 : vector<1x256xf32> to vector<1x2x128xf32>
      %cst_14 = arith.constant dense<0.000000e+00> : vector<1x128xf32>
      %17 = vector.multi_reduction <add>, %16, %cst_14 [1] : vector<1x2x128xf32> to vector<1x128xf32>
      %18 = vector.shape_cast %17 : vector<1x128xf32> to vector<1x1x128xf32>
      %c0_15 = arith.constant 0 : index
      %c0_16 = arith.constant 0 : index
      %c0_17 = arith.constant 0 : index
      %19 = vector.load %arg4[%c0_15, %c0_16, %c0_17] : memref<1x1x128xf32, #tpu.memory_space<vmem>>, vector<1x1x128xf32>
      tpu.vector_store %arg4[%c0_15, %c0_16, %c0_17], %18 {strides = array<i32>} : memref<1x1x128xf32, #tpu.memory_space<vmem>>, vector<1x1x128xf32>,
    } else {
    }
    return
  }
  func.func @transform_0(%arg0: i32, %arg1: i32) -> (i32, i32, i32) {
    %c0_i32 = arith.constant 0 : i32
    %c0_i32_0 = arith.constant 0 : i32
    return %arg0, %c0_i32, %arg1 : i32, i32, i32
  }
  func.func @transform_1(%arg0: i32, %arg1: i32) -> (i32, i32, i32) {
    %c0_i32 = arith.constant 0 : i32
    %c0_i32_0 = arith.constant 0 : i32
    return %arg0, %c0_i32, %arg1 : i32, i32, i32
  }
  func.func @transform_2(%arg0: i32, %arg1: i32) -> (i32, i32, i32) {
    %c0_i32 = arith.constant 0 : i32
    %c0_i32_0 = arith.constant 0 : i32
    %c0_i32_1 = arith.constant 0 : i32
    return %arg0, %c0_i32, %c0_i32_0 : i32, i32, i32
  }
}

</mosaic_0001>

<bundles_post_ra>
// kernel: tpu_custom_call.1
= control target key start
LH: loop header
LB: loop body
LE: loop exit
PB: predicated region body
PF: predicated region fallthrough
CT: control target
= control target key end

     0   :  { %7 = vsyncpa [#allocation4], 0  ;;  %s859_s0 = inlined_call_operand.hbm [shape: f32[2,4,256], index: 0, kind: input, shape index: {}]   ;;  %s860_s1 = inlined_call_operand.hbm [shape: f32[2,4,256], index: 1, kind: input, shape index: {}]   ;;  %s861_s2 = inlined_call_operand.hbm [shape: f32[2,1,128], index: 2, kind: output, shape index: {}]  }
   0x1   :  { %9 = vsyncpa [#allocation4 + $0x1], 0 }
   0x2   :  { %10 = vsyncpa [#allocation7], 0 }
   0x3   :  { %12 = vsyncpa [#allocation7 + $0x1], 0 }
   0x4   :  { %13 = vsyncpa [#allocation5], 0 }
   0x5   :  { %15 = vsyncpa [#allocation5 + $0x1], 0  ;;  %s689_s9 = smov 0   ;;  %s691_s10 = smov 0  }
   0x6   :  { %s693_s11 = smov 0   ;;  %s695_s12 = smov 0  }
   0x7   :  { %s697_s13 = smov 0   ;;  %s699_s14 = smov 0  }
   0x8 LB: > { %s436_s15 = sadd.s32 4294967295, %s667_s14   ;;  %s437_s16 = sadd.s32 4294967294, %s667_s14   ;;  %s667_s14 = sphi %s699_s14, %s21_s14   ;;  %s663_s13 = sphi %s697_s13, %s875_s13   ;;  %s659_s12 = sphi %s695_s12, %s874_s12   ;;  %s655_s11 = sphi %s693_s11, %s873_s11   ;;  %s651_s10 = sphi %s691_s10, %s872_s10   ;;  %s647_s9 = sphi %s689_s9, %s871_s9  }
   0x9   : > { %s33_s17 = sadd.s32 1, %s663_s13  ;;  %s42_s18 = sadd.s32 1, %s655_s11 }
   0xa   : > { %p35_p0 = scmp.ge.s32.totalorder %s33_s17, 2  ;;  %p49_p1 = scmp.ne.s32.totalorder %s655_s11, %s651_s10 }
   0xb   : > { %p50_p2 = scmp.eq.s32.totalorder %s667_s14, 0  ;;  %p55_p3 = scmp.ne.s32.totalorder %s651_s10, %s647_s9 }
   0xc   : > { %s877_s17 = smov (%p35_p0, %s33_s17), 0  ;;  %p56_p5 = scmp.eq.s32.totalorder %s436_s15, 0 }
   0xd   : > { %p730_p4 = por %p50_p2, %p49_p1  ;;  %s37_s20 = ssub.s32 %s663_s13, %s877_s17 }
   0xe   : > { %p107_p6 = scmp.eq.s32.totalorder %s436_s15, 1  ;;  %p40_p7 = scmp.eq.s32.totalorder %s37_s20, 0 }
   0xf   : > { %p736_p8 = por %p56_p5, %p55_p3  ;;  %p113_p10 = scmp.eq.s32.totalorder %s437_s16, 1 }
  0x10   : > { %p740_p9 = por %p107_p6, %p49_p1  ;;  %p471_p13 = scmp.lt.s32.totalorder %s667_s14, 2 }
  0x11   : > { %s745_s23 = scalar_select %p40_p7, %s655_s11, %s42_s18  }
  0x12   : > { %p747_p11 = por %p113_p10, %p55_p3  ;;  %s754_s25 = sand.u32 1, %s655_s11  }
  0x13   : > { %s440_s26 = sshll.u32 %s754_s25, 3  ;;  %s452_s27 = sshll.u32 %s663_s13, 7 }
  0x14   : > { %s145_s30 = scalar_lea.hbm %s859_s0, %s452_s27  ;;  %s137_s3 = scalar_lea.vmem [#allocation3], %s440_s26 }
  0x15   : > { %s147_s4 = sshll.u32 %s137_s3, 4  ;;  %p763_p0 = pnand %p471_p13, %p730_p4  ;;  %s148_s4 = int_to_ptr.vmem [resolvable:$true] %s147_s4 }
  0x16   : > { %p446_p1 = scmp.ge.s32.totalorder %s667_s14, 1  ;;  %p173_p2 = scmp.lt.s32.totalorder %s667_s14, 3 }
  0x17   : > { %s134_s6 = scalar_lea.sflag [#allocation4], %s754_s25  ;;  %p529_p3 = pneg %p763_p0 }
  0x18   : > { %s540_s7 = scalar_lea.vmem %s148_s4, 128  ;;  %s669_s8 = smov [#allocation3]  }
  0x19   : > { %p541_p5 = scmp.ne.s32.totalorder %s148_s4, %s540_s7  ;;  %s545_s15 = sshll.u32 %s669_s8, 4  ;;  %s546_s15 = int_to_ptr.vmem [resolvable:$false] %s545_s15 }
  0x1a   : > { %s547_s16 = scalar_lea.vmem %s546_s15, 256  ;;  %p548_p4 = scmp.lt.s32.totalorder %s148_s4, %s546_s15 }
  0x1b   : > { %p543_p6 = pnand %p541_p5, %p529_p3  ;;  %p549_p10 = scmp.lt.s32.totalorder %s547_s16, %s540_s7 }
  0x1d   : > { %p544_p7 = pneg %p543_p6  ;;  %p550_p13 = por %p549_p10, %p548_p4 }
  0x1f   : > { %p551_p12 = pnand %p550_p13, %p544_p7 }
  0x21   : > { %554 = shalt.err (!%p551_p12)
}
  0x22   : > { %463 = dma.hbm_to_vmem [thread:$0]  (!%p763_p0), %s145_s30, 128, %s148_s4, %s134_s6  }
  0x23   : > { %p781_p5 = pnand %p446_p1, %p173_p2  ;;  %s166_s28 = scalar_lea.hbm %s860_s1, %s452_s27 }
  0x24   : > { %s158_s29 = scalar_lea.vmem [#allocation6], %s440_s26  ;;  %s155_s7 = scalar_lea.sflag [#allocation7], %s754_s25 }
  0x25   : > { %s168_s3 = sshll.u32 %s158_s29, 4  ;;  %s670_s30 = smov [#allocation6]   ;;  %s169_s3 = int_to_ptr.vmem [resolvable:$true] %s168_s3 }
  0x26   : > { %s568_s8 = scalar_lea.vmem %s169_s3, 128  ;;  %s573_s4 = sshll.u32 %s670_s30, 4  ;;  %s574_s4 = int_to_ptr.vmem [resolvable:$false] %s573_s4 }
  0x27   : > { %p569_p12 = scmp.ne.s32.totalorder %s169_s3, %s568_s8  ;;  %s575_s6 = scalar_lea.vmem %s574_s4, 256 }
  0x28   : > { %p576_p1 = scmp.lt.s32.totalorder %s169_s3, %s574_s4  ;;  %p577_p2 = scmp.lt.s32.totalorder %s575_s6, %s568_s8 }
  0x29   : > { %p571_p6 = pnand %p569_p12, %p529_p3 }
  0x2a   : > { %p578_p4 = por %p577_p2, %p576_p1 }
  0x2b   : > { %p572_p7 = pneg %p571_p6 }
  0x2d   : > { %p579_p10 = pnand %p578_p4, %p572_p7 }
  0x2f   : > { %582 = shalt.err (!%p579_p10)
}
  0x30   : > { %466 = dma.hbm_to_vmem [thread:$0]  (!%p763_p0), %s166_s28, 128, %s169_s3, %s155_s7  }
  0x31   : > { %177 = sbr.rel (%p781_p5) target bundleno = 145 (0x91), region = 28  ;;  %s797_s25 = sand.u32 (!%p781_p5), 1, %s651_s10  }
  0x32   : > { %s447_s26 = sshll.u32 (!%p781_p5), %s797_s25, 3  ;;  %s180_s27 = scalar_lea.sflag (!%p781_p5), [#allocation4], %s797_s25 }
  0x33   : > { %s183_s15 = scalar_lea.vmem (!%p781_p5), [#allocation3], %s447_s26 }
  0x36   : > { %634 = dma.done.wait (%p736_p8), %s180_s27, 128  }
  0x37   : > { %636 = vsyncadd (%p736_p8), %s180_s27, 4294967168  ;;  %s189_s5 = scalar_lea.sflag [#allocation7], %s797_s25  ;;  %s192_s16 = scalar_lea.vmem [#allocation6], %s447_s26 }
  0x38   : > { %638 = dma.done.wait (%p736_p8), %s189_s5, 128  }
  0x39   : > { %640 = vsyncadd (%p736_p8), %s189_s5, 4294967168  ;;  %v223_v0 = vlaneseq  ;;  %v671_v2 = vmov 0.0   ;;  %v228_v3 = vld [vmem:[%s183_s15] sm:$0xff]  ;;  %v229_v4 = vld [vmem:[%s192_s16] sm:$0xff]  ;;  %vm235_vm1 = vcmask 1043456   ;;  %vm311_vm6 = vcmask 1041408  }
  0x3a   : > { %v230_v5 = vsub.f32 %v228_v3, %v229_v4  ;;  %v672_v22 = vmov 1966171168   ;;  %s216_s21 = scalar_lea.vmem [#allocation8], %s797_s25  ;;  %s449_s19 = sshll.u32 %s659_s12, 4 }
  0x3b   : > { %vm810_vm0 = vcmp.lt.s32.totalorder %v223_v0, 256  ;;  %v269_v23 = vunpack.c.l.s4 %v672_v22  ;;  %v272_v27 = vshrl.u32 %v223_v0, 7  ;;  %s333_s18 = sshll.u32 %s216_s21, 4  ;;  %s331_s29 = scalar_lea.hbm %s861_s2, %s449_s19  ;;  %s334_s18 = int_to_ptr.vmem [resolvable:$true] %s333_s18 }
  0x3c   : > { %227 = vst.msk [vmem:[#allocation2] sm:$0x3] %vm810_vm0, %v671_v2  ;;  %v231_v6 = vmul.f32 %v230_v5, %v230_v5  ;;  %s321_s3 = scalar_lea.sflag [#allocation5], %s797_s25  ;;  %s583_s7 = scalar_lea.vmem %s334_s18, 16 }
  0x3d   : > { %v270_v26 = vunpack.c.0.s8 %v269_v23  ;;  %p584_p8 = scmp.ne.s32.totalorder %s334_s18, %s583_s7  ;;  %s673_s8 = smov [#allocation8]  }
  0x3e   : > { %v233_v7 = vcombine.high %v231_v6, %v231_v6  ;;  %v236_v8 = vsel %vm235_vm1, %v231_v6, 0.0  ;;  %s587_s30 = sshll.u32 %s673_s8, 4  ;;  %s588_s30 = int_to_ptr.vmem [resolvable:$false] %s587_s30 }
  0x3f   : > { %v237_v9 = vrot.slane %v236_v8, 4  ;;  %v273_v34 = vsub.s32 %v270_v26, %v272_v27  ;;  %p585_p0 = pnand %p584_p8, %p740_p9  ;;  %s589_s4 = scalar_lea.vmem %s588_s30, 32 }
  0x40   : > { %v243_v10 = vsel %vm235_vm1, %v233_v7, 0.0  ;;  %p590_p13 = scmp.lt.s32.totalorder %s334_s18, %s588_s30  ;;  %p591_p5 = scmp.lt.s32.totalorder %s589_s4, %s583_s7 }
  0x41   : > { %v238_v11 = vadd.f32 %v237_v9, %v236_v8  ;;  %v244_v12 = vrot.slane %v243_v10, 4  ;;  %p586_p3 = pneg %p585_p0 }
  0x42   : > { %p592_p12 = por %p591_p5, %p590_p13 }
  0x43   : > { %v239_v13 = vrot.slane %v238_v11, 2  ;;  %v245_v14 = vadd.f32 %v244_v12, %v243_v10  ;;  %v250_v39 = vld [vmem:[#allocation2] sm:$0x3] }
  0x44   : > { %p593_p6 = pnand %p592_p12, %p586_p3 }
  0x45   : > { %v240_v15 = vadd.f32 %v239_v13, %v238_v11  ;;  %v246_v16 = vrot.slane %v245_v14, 2 }
  0x47   : > { %v241_v17 = vrot.slane %v240_v15, 1  ;;  %v247_v18 = vadd.f32 %v246_v16, %v245_v14 }
  0x49   : > { %v242_v19 = vadd.f32 %v241_v17, %v240_v15  ;;  %v248_v20 = vrot.slane %v247_v18, 1 }
  0x4b   : > { %v249_v21 = vadd.f32 %v248_v20, %v247_v18  ;;  %523 = vrsqrt.f32 %v242_v19  ;;  %vm253_vm2 = vcmp.eq.f32.partialorder %v242_v19, inf  ;;  %v256_v25 = vand.u32 2147483648, %v242_v19 }
  0x4c   : > { %vm255_vm3 = vcmp.eq.f32.partialorder %v242_v19, 0.0 }
  0x4d   : > { %525 = vrsqrt.f32 %v249_v21  ;;  %vm260_vm4 = vcmp.eq.f32.partialorder %v249_v21, inf  ;;  %v263_v30 = vand.u32 2147483648, %v249_v21  ;;  %vm262_vm5 = vcmp.eq.f32.partialorder %v249_v21, 0.0 }
  0x58   : > { %v524_v24 = vpop.eup %523 }
  0x59   : > { %v252_v28 = vmul.f32 %v524_v24, %v242_v19 }
  0x5a   : > { %v526_v29 = vpop.eup %525 }
  0x5b   : > { %v254_v31 = vsel %vm253_vm2, %v242_v19, %v252_v28  ;;  %v259_v32 = vmul.f32 %v526_v29, %v249_v21 }
  0x5c   : > { %v257_v33 = vsel %vm255_vm3, %v256_v25, %v254_v31 }
  0x5d   : > { %v261_v35 = vsel %vm260_vm4, %v249_v21, %v259_v32 }
  0x5e   : > { %v264_v36 = vsel %vm262_vm5, %v263_v30, %v261_v35 }
  0x5f   : > { %v267_v37 = vcombine.low %v257_v33, %v264_v36 }
  0x61   : > { %v274_v38 = vrot.slane %v267_v37, %v273_v34 }
  0x63   : > { %v281_v40 = vrot.slane %v274_v38, %v273_v34 }
  0x65   : > { %v283_v41 = vadd.f32 %v281_v40, %v250_v39 }
  0x67   : > { %288 = vst.msk [vmem:[#allocation2] sm:$0x3] %vm810_vm0, %v283_v41 }
  0x6e   : > { %v292_v42 = vld [vmem:[#allocation2] sm:$0x3] }
  0x6f   : > { %v294_v43 = vrot.slane %v292_v42, 1 }
  0x71   : > { %v295_v44 = vcombine.low %v292_v42, %v294_v43 }
  0x73   : > { %v302_v45 = vrot.slane %v295_v44, %v273_v34 }
  0x75   : > { %v309_v46 = vrot.slane %v302_v45, %v273_v34 }
  0x77   : > { %v312_v47 = vsel %vm311_vm6, %v309_v46, 0.0 }
  0x78   : > { %v313_v48 = vrot.slane %v312_v47, 4 }
  0x7a   : > { %v314_v49 = vadd.f32 %v313_v48, %v312_v47 }
  0x7c   : > { %v315_v50 = vrot.slane %v314_v49, 2 }
  0x7e   : > { %v316_v51 = vadd.f32 %v315_v50, %v314_v49 }
  0x80   : > { %v317_v52 = vrot.slane %v316_v51, 1 }
  0x82   : > { %v318_v53 = vadd.f32 %v317_v52, %v316_v51 }
  0x84   : > { %319 = vst [vmem:[%s216_s21] sm:$0x1] %v318_v53 }
  0x85   : > { %596 = shalt.err (!%p593_p6)
}
  0x86   : > { %s597_s12 = scalar_lea.hbm %s331_s29, 16  ;;  %s601_s26 = scalar_lea.hbm %s861_s2, 32 }
  0x87   : > { %p598_p7 = scmp.ne.s32.totalorder %s331_s29, %s597_s12  ;;  %p602_p4 = scmp.lt.s32.totalorder %s331_s29, %s861_s2 }
  0x88   : > { %p603_p10 = scmp.lt.s32.totalorder %s601_s26, %s597_s12 }
  0x89   : > { %p599_p1 = pnand %p598_p7, %p740_p9 }
  0x8a   : > { %p604_p8 = por %p603_p10, %p602_p4 }
  0x8b   : > { %p600_p2 = pneg %p599_p1 }
  0x8d   : > { %p605_p0 = pnand %p604_p8, %p600_p2 }
  0x8f   : > { %608 = shalt.err (!%p605_p0)
}
  0x90   : > { %458 = dma.vmem_to_hbm [thread:$0]  (%p740_p9), %s334_s18, 16, %s331_s29, %s321_s3  }
  0x91 PF: > { %s345_s5 = sand.u32 1, %s647_s9   ;;  %p870_p3 = scmp.ge.s32.totalorder %s667_s14, 2 }
  0x92   : > { %s346_s16 = scalar_lea.sflag [#allocation5], %s345_s5 }
  0x93   : > { %p468_p13 = pnand %p870_p3, %p747_p11 }
  0x95   : > { %p469_p5 = pneg %p468_p13 }
  0x97   : > { %642 = dma.done.wait (%p469_p5), %s346_s16, 16  }
  0x98   : > { %644 = vsyncadd (%p469_p5), %s346_s16, 4294967280  ;;  %s21_s14 = sadd.s32 1, %s667_s14   ;;  %s871_s9 = smov %s651_s10 }
  0x99   : > { %p18_p12 = scmp.ge.s32.totalorder %s21_s14, 4   ;;  %s872_s10 = smov %s655_s11 }
  0x9a   : > { %s873_s11 = smov %s745_s23  ;;  %s874_s12 = smov %s663_s13 }
  0x9b   : > { %s875_s13 = smov %s877_s17  ;;  %20 = sbr.rel (!%p18_p12) target bundleno = 8 (0x8), region = 94 }
  0xa0   :  { %350 = vsyncpa [#allocation4], 1 }
  0xa1   :  { %352 = vsyncpa [#allocation4 + $0x1], 1 }
  0xa2   :  { %353 = vsyncpa [#allocation7], 1 }
  0xa3   :  { %355 = vsyncpa [#allocation7 + $0x1], 1 }
  0xa4   :  { %356 = vsyncpa [#allocation5], 1 }
  0xa5   :  { %358 = vsyncpa [#allocation5 + $0x1], 1 }

</bundles_post_ra>
